<compile_context>
chip_gen: v5e
topology: v5e:2x2
jax: 0.10.0
libtpu: 0.0.40
codegen_flags: <defaults>
</compile_context>

<pallas_src>
import functools

import jax
import jax.numpy as jnp
from jax.experimental import pallas as pl
from jax.experimental.pallas import tpu as pltpu

LANE = 128
# 8192 rows x 128 lanes x 4 B = 4 MiB per input per pipeline buffer.
MAX_BLOCK_ROWS = 8192
# Multiple of 32 so the block sublane dim satisfies the tiling constraint for
# f32 (8), bf16 (16) and int8/bool (32) inputs alike.
ROW_ALIGN = 32


def _dice_kernel(pr_ref, gt_ref, tp_ref, sp_ref, sg_ref, *,
                 block_rows, rem, needs_mask):
    """One grid step: reduce a (block_rows, LANE) tile to (8, LANE) partials.

    tp_ref / sp_ref / sg_ref: (1, 8, LANE) f32 per-block partial sums of
    gt*sigmoid(pr), sigmoid(pr) and gt respectively.
    """
    i = pl.program_id(0)

    def compute(masked):
        # Promote to f32 in-VMEM; inputs stream in their native dtype.
        p = jax.nn.sigmoid(pr_ref[...].astype(jnp.float32))
        g = gt_ref[...].astype(jnp.float32)
        if masked:
            # Only the last block has a tail (row / lane padding or grid
            # overhang); mask it against the true element count. `rem` is a
            # trace-time constant.
            row = jax.lax.broadcasted_iota(jnp.int32, (block_rows, LANE), 0)
            lane = jax.lax.broadcasted_iota(jnp.int32, (block_rows, LANE), 1)
            valid = (row * LANE + lane) < rem
            p = jnp.where(valid, p, 0.0)
            g = jnp.where(valid, g, 0.0)

        def r8(x):
            # (block_rows, LANE) -> (8, LANE): layout-preserving reshape plus
            # VALU vreg adds; the cross-sublane/lane reduce happens later.
            return jnp.sum(x.reshape(block_rows // 8, 8, LANE), axis=0)

        tp_ref[0] = r8(g * p)
        sp_ref[0] = r8(p)
        sg_ref[0] = r8(g)

    if needs_mask:
        last = pl.num_programs(0) - 1

        @pl.when(i == last)
        def _():
            compute(True)

        @pl.when(i != last)
        def _():
            compute(False)
    else:
        compute(False)


def dice_loss(y_pr, y_gt, *, eps=1e-07):
    """Pallas TPU implementation of DiceLoss.forward (activation='sigmoid')."""
    pr = y_pr.reshape(-1)
    gt = y_gt.reshape(-1)
    n = pr.shape[0]

    rows = -(-n // LANE)
    block_rows = min(MAX_BLOCK_ROWS, ((rows + ROW_ALIGN - 1) // ROW_ALIGN) * ROW_ALIGN)
    # Array rows never smaller than one block (only matters for tiny inputs,
    # where the pad below is at most ROW_ALIGN rows).
    arr_rows = max(rows, block_rows)
    num_blocks = -(-arr_rows // block_rows)

    flat_pad = arr_rows * LANE - n
    if flat_pad:
        # TODO(synk): only a <128-element (or tiny-input) pad; large aligned
        # inputs take the zero-copy path. Pad values are masked in-kernel.
        pr = jnp.pad(pr, (0, flat_pad))
        gt = jnp.pad(gt, (0, flat_pad))
    pr = pr.reshape(arr_rows, LANE)
    gt = gt.reshape(arr_rows, LANE)

    covered = num_blocks * block_rows * LANE
    needs_mask = covered != n
    rem = n - (num_blocks - 1) * block_rows * LANE  # valid elems in last block

    in_spec = pl.BlockSpec((block_rows, LANE), lambda i: (i, 0))
    out_spec = pl.BlockSpec((1, 8, LANE), lambda i: (i, 0, 0))
    part_shape = jax.ShapeDtypeStruct((num_blocks, 8, LANE), jnp.float32)

    tp_p, sp_p, sg_p = pl.pallas_call(
        functools.partial(
            _dice_kernel,
            block_rows=block_rows,
            rem=rem,
            needs_mask=needs_mask,
        ),
        out_shape=(part_shape, part_shape, part_shape),
        grid_spec=pltpu.PrefetchScalarGridSpec(
            num_scalar_prefetch=0,
            grid=(num_blocks,),
            in_specs=[in_spec, in_spec],
            out_specs=[out_spec, out_spec, out_spec],
        ),
        compiler_params=pltpu.CompilerParams(
            # Independent per-block partials -> parallel; on v7x the row range
            # is sharded across both TensorCores.
            dimension_semantics=("parallel",),
            vmem_limit_bytes=48 * 1024 * 1024,
        ),
    )(pr, gt)

    # Tiny epilogue (num_blocks * 8 * 128 floats per array) as plain XLA ops.
    tp = jnp.sum(tp_p)
    sum_pr = jnp.sum(sp_p)
    sum_gt = jnp.sum(sg_p)
    fp = sum_pr - tp
    fn = sum_gt - tp
    score = (2.0 * tp + eps) / (2.0 * tp + fn + fp + eps)
    return 1.0 - score


def _dice_loss_ref(y_pr, y_gt, eps=1e-07):
    p = jax.nn.sigmoid(y_pr.astype(jnp.float32))
    g = y_gt.astype(jnp.float32)
    tp = jnp.sum(g * p)
    fp = jnp.sum(p) - tp
    fn = jnp.sum(g) - tp
    score = (2.0 * tp + eps) / (2.0 * tp + fn + fp + eps)
    return 1.0 - score


if __name__ == "__main__":
    key = jax.random.PRNGKey(0)
    k1, k2, k3, k4, k5, k6 = jax.random.split(key, 6)

    # Primary NCHW inputs, same convention as the PyTorch module.
    y_pr = jax.random.normal(k1, (2, 4, 16, 16), dtype=jnp.float32)     # logits
    y_gt = jax.random.bernoulli(k2, 0.3, (2, 4, 16, 16)).astype(jnp.float32)
    loss = jax.block_until_ready(dice_loss(y_pr, y_gt))
    ref = _dice_loss_ref(y_pr, y_gt)
    assert jnp.allclose(loss, ref, atol=1e-5, rtol=1e-5), (loss, ref)

    # Ragged size (n % 128 != 0): exercises the in-kernel tail mask.
    y_pr2 = jax.random.normal(k3, (2, 3, 5, 7), dtype=jnp.float32)
    y_gt2 = jax.random.bernoulli(k4, 0.5, (2, 3, 5, 7)).astype(jnp.float32)
    loss2 = jax.block_until_ready(dice_loss(y_pr2, y_gt2))
    ref2 = _dice_loss_ref(y_pr2, y_gt2)
    assert jnp.allclose(loss2, ref2, atol=1e-5, rtol=1e-5), (loss2, ref2)

    # bf16 logits streamed natively (promoted to f32 in-kernel).
    y_pr3 = jax.random.normal(k5, (1, 2, 16, 16), dtype=jnp.bfloat16)
    y_gt3 = jax.random.bernoulli(k6, 0.3, (1, 2, 16, 16)).astype(jnp.float32)
    loss3 = jax.block_until_ready(dice_loss(y_pr3, y_gt3))
    ref3 = _dice_loss_ref(y_pr3, y_gt3)
    assert jnp.allclose(loss3, ref3, atol=1e-5, rtol=1e-5), (loss3, ref3)

    print("KERNEL_OK")
</pallas_src>

<mosaic_0001>
module attributes {stable_mosaic.version = 11 : i64} {
  func.func @_dice_kernel(%arg0: i32, %arg1: memref<32x128xf32, #tpu.memory_space<vmem>>, %arg2: memref<32x128xf32, #tpu.memory_space<vmem>>, %arg3: memref<1x8x128xf32, #tpu.memory_space<vmem>>, %arg4: memref<1x8x128xf32, #tpu.memory_space<vmem>>, %arg5: memref<1x8x128xf32, #tpu.memory_space<vmem>>) attributes {dimension_semantics = [#tpu.dimension_semantics<parallel>], iteration_bounds = array<i64: 1>, scalar_prefetch = 0 : i64, scratch_operands = 0 : i64, tpu.core_type = #tpu.core_type<tc>, window_params = [{transform_indices = @transform_0, window_bounds = array<i64: 32, 128>}, {transform_indices = @transform_1, window_bounds = array<i64: 32, 128>}, {transform_indices = @transform_2, window_bounds = array<i64: 1, 8, 128>}, {transform_indices = @transform_3, window_bounds = array<i64: 1, 8, 128>}, {transform_indices = @transform_4, window_bounds = array<i64: 1, 8, 128>}]} {
    %c0_i32 = arith.constant 0 : i32
    %0 = arith.cmpi eq, %arg0, %c0_i32 : i32
    %1 = arith.extui %0 : i1 to i32
    %c0_i32_0 = arith.constant 0 : i32
    %2 = arith.cmpi ne, %1, %c0_i32_0 : i32
    scf.if %2 {
      %c0 = arith.constant 0 : index
      %c0_3 = arith.constant 0 : index
      %6 = vector.load %arg1[%c0, %c0_3] : memref<32x128xf32, #tpu.memory_space<vmem>>, vector<32x128xf32>
      %7 = arith.negf %6 : vector<32x128xf32>
      %8 = math.exp %7 : vector<32x128xf32>
      %cst = arith.constant 1.000000e+00 : f32
      %9 = vector.broadcast %cst : f32 to vector<32x128xf32>
      %10 = arith.addf %9, %8 : vector<32x128xf32>
      %11 = arith.divf %9, %10 : vector<32x128xf32>
      %c0_4 = arith.constant 0 : index
      %c0_5 = arith.constant 0 : index
      %12 = vector.load %arg2[%c0_4, %c0_5] : memref<32x128xf32, #tpu.memory_space<vmem>>, vector<32x128xf32>
      %13 = tpu.iota {dimensions = array<i32: 0>} : vector<32x128xi32>
      %14 = tpu.iota {dimensions = array<i32: 1>} : vector<32x128xi32>
      %c128_i32 = arith.constant 128 : i32
      %15 = vector.broadcast %c128_i32 : i32 to vector<32x128xi32>
      %16 = arith.muli %13, %15 : vector<32x128xi32>
      %17 = arith.addi %16, %14 : vector<32x128xi32>
      %c2048_i32 = arith.constant 2048 : i32
      %18 = vector.broadcast %c2048_i32 : i32 to vector<32x128xi32>
      %19 = arith.cmpi slt, %17, %18 : vector<32x128xi32>
      %cst_6 = arith.constant 0.000000e+00 : f32
      %20 = vector.broadcast %cst_6 : f32 to vector<32x128xf32>
      %21 = arith.select %19, %11, %20 : vector<32x128xi1>, vector<32x128xf32>
      %cst_7 = arith.constant 0.000000e+00 : f32
      %22 = vector.broadcast %cst_7 : f32 to vector<32x128xf32>
      %23 = arith.select %19, %12, %22 : vector<32x128xi1>, vector<32x128xf32>
      %24 = arith.mulf %23, %21 : vector<32x128xf32>
      %25 = vector.shape_cast %24 : vector<32x128xf32> to vector<4x8x128xf32>
      %cst_8 = arith.constant dense<0.000000e+00> : vector<8x128xf32>
      %26 = vector.multi_reduction <add>, %25, %cst_8 [0] : vector<4x8x128xf32> to vector<8x128xf32>
      %c0_9 = arith.constant 0 : index
      %c0_10 = arith.constant 0 : index
      %c0_11 = arith.constant 0 : index
      %27 = vector.load %arg3[%c0_9, %c0_10, %c0_11] : memref<1x8x128xf32, #tpu.memory_space<vmem>>, vector<1x8x128xf32>
      %28 = vector.shape_cast %27 : vector<1x8x128xf32> to vector<8x128xf32>
      %29 = vector.shape_cast %26 : vector<8x128xf32> to vector<1x8x128xf32>
      tpu.vector_store %arg3[%c0_9, %c0_10, %c0_11], %29 {strides = array<i32>} : memref<1x8x128xf32, #tpu.memory_space<vmem>>, vector<1x8x128xf32>,
      %30 = vector.shape_cast %21 : vector<32x128xf32> to vector<4x8x128xf32>
      %cst_12 = arith.constant dense<0.000000e+00> : vector<8x128xf32>
      %31 = vector.multi_reduction <add>, %30, %cst_12 [0] : vector<4x8x128xf32> to vector<8x128xf32>
      %c0_13 = arith.constant 0 : index
      %c0_14 = arith.constant 0 : index
      %c0_15 = arith.constant 0 : index
      %32 = vector.load %arg4[%c0_13, %c0_14, %c0_15] : memref<1x8x128xf32, #tpu.memory_space<vmem>>, vector<1x8x128xf32>
      %33 = vector.shape_cast %32 : vector<1x8x128xf32> to vector<8x128xf32>
      %34 = vector.shape_cast %31 : vector<8x128xf32> to vector<1x8x128xf32>
      tpu.vector_store %arg4[%c0_13, %c0_14, %c0_15], %34 {strides = array<i32>} : memref<1x8x128xf32, #tpu.memory_space<vmem>>, vector<1x8x128xf32>,
      %35 = vector.shape_cast %23 : vector<32x128xf32> to vector<4x8x128xf32>
      %cst_16 = arith.constant dense<0.000000e+00> : vector<8x128xf32>
      %36 = vector.multi_reduction <add>, %35, %cst_16 [0] : vector<4x8x128xf32> to vector<8x128xf32>
      %c0_17 = arith.constant 0 : index
      %c0_18 = arith.constant 0 : index
      %c0_19 = arith.constant 0 : index
      %37 = vector.load %arg5[%c0_17, %c0_18, %c0_19] : memref<1x8x128xf32, #tpu.memory_space<vmem>>, vector<1x8x128xf32>
      %38 = vector.shape_cast %37 : vector<1x8x128xf32> to vector<8x128xf32>
      %39 = vector.shape_cast %36 : vector<8x128xf32> to vector<1x8x128xf32>
      tpu.vector_store %arg5[%c0_17, %c0_18, %c0_19], %39 {strides = array<i32>} : memref<1x8x128xf32, #tpu.memory_space<vmem>>, vector<1x8x128xf32>,
    } else {
    }
    %c0_i32_1 = arith.constant 0 : i32
    %3 = arith.cmpi ne, %arg0, %c0_i32_1 : i32
    %4 = arith.extui %3 : i1 to i32
    %c0_i32_2 = arith.constant 0 : i32
    %5 = arith.cmpi ne, %4, %c0_i32_2 : i32
    scf.if %5 {
      %c0 = arith.constant 0 : index
      %c0_3 = arith.constant 0 : index
      %6 = vector.load %arg1[%c0, %c0_3] : memref<32x128xf32, #tpu.memory_space<vmem>>, vector<32x128xf32>
      %7 = arith.negf %6 : vector<32x128xf32>
      %8 = math.exp %7 : vector<32x128xf32>
      %cst = arith.constant 1.000000e+00 : f32
      %9 = vector.broadcast %cst : f32 to vector<32x128xf32>
      %10 = arith.addf %9, %8 : vector<32x128xf32>
      %11 = arith.divf %9, %10 : vector<32x128xf32>
      %c0_4 = arith.constant 0 : index
      %c0_5 = arith.constant 0 : index
      %12 = vector.load %arg2[%c0_4, %c0_5] : memref<32x128xf32, #tpu.memory_space<vmem>>, vector<32x128xf32>
      %13 = arith.mulf %12, %11 : vector<32x128xf32>
      %14 = vector.shape_cast %13 : vector<32x128xf32> to vector<4x8x128xf32>
      %cst_6 = arith.constant dense<0.000000e+00> : vector<8x128xf32>
      %15 = vector.multi_reduction <add>, %14, %cst_6 [0] : vector<4x8x128xf32> to vector<8x128xf32>
      %c0_7 = arith.constant 0 : index
      %c0_8 = arith.constant 0 : index
      %c0_9 = arith.constant 0 : index
      %16 = vector.load %arg3[%c0_7, %c0_8, %c0_9] : memref<1x8x128xf32, #tpu.memory_space<vmem>>, vector<1x8x128xf32>
      %17 = vector.shape_cast %16 : vector<1x8x128xf32> to vector<8x128xf32>
      %18 = vector.shape_cast %15 : vector<8x128xf32> to vector<1x8x128xf32>
      tpu.vector_store %arg3[%c0_7, %c0_8, %c0_9], %18 {strides = array<i32>} : memref<1x8x128xf32, #tpu.memory_space<vmem>>, vector<1x8x128xf32>,
      %19 = vector.shape_cast %11 : vector<32x128xf32> to vector<4x8x128xf32>
      %cst_10 = arith.constant dense<0.000000e+00> : vector<8x128xf32>
      %20 = vector.multi_reduction <add>, %19, %cst_10 [0] : vector<4x8x128xf32> to vector<8x128xf32>
      %c0_11 = arith.constant 0 : index
      %c0_12 = arith.constant 0 : index
      %c0_13 = arith.constant 0 : index
      %21 = vector.load %arg4[%c0_11, %c0_12, %c0_13] : memref<1x8x128xf32, #tpu.memory_space<vmem>>, vector<1x8x128xf32>
      %22 = vector.shape_cast %21 : vector<1x8x128xf32> to vector<8x128xf32>
      %23 = vector.shape_cast %20 : vector<8x128xf32> to vector<1x8x128xf32>
      tpu.vector_store %arg4[%c0_11, %c0_12, %c0_13], %23 {strides = array<i32>} : memref<1x8x128xf32, #tpu.memory_space<vmem>>, vector<1x8x128xf32>,
      %24 = vector.shape_cast %12 : vector<32x128xf32> to vector<4x8x128xf32>
      %cst_14 = arith.constant dense<0.000000e+00> : vector<8x128xf32>
      %25 = vector.multi_reduction <add>, %24, %cst_14 [0] : vector<4x8x128xf32> to vector<8x128xf32>
      %c0_15 = arith.constant 0 : index
      %c0_16 = arith.constant 0 : index
      %c0_17 = arith.constant 0 : index
      %26 = vector.load %arg5[%c0_15, %c0_16, %c0_17] : memref<1x8x128xf32, #tpu.memory_space<vmem>>, vector<1x8x128xf32>
      %27 = vector.shape_cast %26 : vector<1x8x128xf32> to vector<8x128xf32>
      %28 = vector.shape_cast %25 : vector<8x128xf32> to vector<1x8x128xf32>
      tpu.vector_store %arg5[%c0_15, %c0_16, %c0_17], %28 {strides = array<i32>} : memref<1x8x128xf32, #tpu.memory_space<vmem>>, vector<1x8x128xf32>,
    } else {
    }
    return
  }
  func.func @transform_0(%arg0: i32) -> (i32, i32) {
    %c0_i32 = arith.constant 0 : i32
    %c0_i32_0 = arith.constant 0 : i32
    return %arg0, %c0_i32 : i32, i32
  }
  func.func @transform_1(%arg0: i32) -> (i32, i32) {
    %c0_i32 = arith.constant 0 : i32
    %c0_i32_0 = arith.constant 0 : i32
    return %arg0, %c0_i32 : i32, i32
  }
  func.func @transform_2(%arg0: i32) -> (i32, i32, i32) {
    %c0_i32 = arith.constant 0 : i32
    %c0_i32_0 = arith.constant 0 : i32
    %c0_i32_1 = arith.constant 0 : i32
    return %arg0, %c0_i32, %c0_i32_0 : i32, i32, i32
  }
  func.func @transform_3(%arg0: i32) -> (i32, i32, i32) {
    %c0_i32 = arith.constant 0 : i32
    %c0_i32_0 = arith.constant 0 : i32
    %c0_i32_1 = arith.constant 0 : i32
    return %arg0, %c0_i32, %c0_i32_0 : i32, i32, i32
  }
  func.func @transform_4(%arg0: i32) -> (i32, i32, i32) {
    %c0_i32 = arith.constant 0 : i32
    %c0_i32_0 = arith.constant 0 : i32
    %c0_i32_1 = arith.constant 0 : i32
    return %arg0, %c0_i32, %c0_i32_0 : i32, i32, i32
  }
}

</mosaic_0001>

<bundles_post_ra>
// kernel: tpu_custom_call.1
= control target key start
LH: loop header
LB: loop body
LE: loop exit
PB: predicated region body
PF: predicated region fallthrough
CT: control target
= control target key end

     0   :  { %10 = vsyncpa [#allocation3], 0  ;;  %s610_s0 = inlined_call_operand.hbm [shape: f32[32,128], index: 0, kind: input, shape index: {}]   ;;  %s611_s1 = inlined_call_operand.hbm [shape: f32[32,128], index: 1, kind: input, shape index: {}]   ;;  %s612_s2 = inlined_call_operand.hbm [shape: f32[1,8,128], index: 2, kind: output, shape index: {0}]   ;;  %s613_s3 = inlined_call_operand.hbm [shape: f32[1,8,128], index: 3, kind: output, shape index: {1}]   ;;  %s614_s4 = inlined_call_operand.hbm [shape: f32[1,8,128], index: 4, kind: output, shape index: {2}]  }
   0x1   :  { %11 = vsyncpa [#allocation6], 0 }
   0x2   :  { %12 = vsyncpa [#allocation4], 0 }
   0x3   :  { %13 = vsyncpa [#allocation9], 0  ;;  %s18_s17 = sshll.u32 %s610_s0, 4  ;;  %s491_s18 = smov [#allocation2]   ;;  %s19_s17 = int_to_ptr.hbm [resolvable:$true] %s18_s17 }
   0x4   :  { %s20_s19 = sshll.u32 %s491_s18, 4  ;;  %s31_s22 = sshll.u32 %s611_s1, 4  ;;  %s21_s19 = int_to_ptr.vmem [resolvable:$true] %s20_s19  ;;  %s32_s22 = int_to_ptr.hbm [resolvable:$true] %s31_s22 }
   0x5   :  { %s492_s23 = smov 128   ;;  %s493_s24 = smov 8  }
   0x6   :  { %26 = dma.hbm_to_vmem [thread:$0]  %s19_s17, 512, %s21_s19, [#allocation3], %s492_s23, %s492_s23, %s493_s24  }
   0x7   :  { %s494_s25 = smov [#allocation5]  }
   0x8   :  { %s33_s26 = sshll.u32 %s494_s25, 4  ;;  %s34_s26 = int_to_ptr.vmem [resolvable:$true] %s33_s26 }
   0x9   :  { %39 = dma.hbm_to_vmem [thread:$0]  %s32_s22, 512, %s34_s26, [#allocation6], %s492_s23, %s492_s23, %s493_s24  }
   0xa   :  { %483 = dma.done.wait [#allocation3], 512  }
   0xb   :  { %484 = vsyncadd [#allocation3], 4294966784 }
   0xc   :  { %485 = dma.done.wait [#allocation6], 512  }
   0xd   :  { %486 = vsyncadd [#allocation6], 4294966784  ;;  %v136_v0 = vlaneseq  ;;  %v52_v11 = vld [vmem:[#allocation2] sm:$0xff]  ;;  %v53_v12 = vld [vmem:[#allocation2 + $0x8] sm:$0xff]  ;;  %s495_s0 = smov [#allocation8]   ;;  %s301_s29 = sshll.u32 %s613_s3, 4  ;;  %s302_s29 = int_to_ptr.hbm [resolvable:$true] %s301_s29 }
   0xe   :  { %v54_v13 = vld [vmem:[#allocation2 + $0x10] sm:$0xff]  ;;  %v55_v14 = vld [vmem:[#allocation2 + $0x18] sm:$0xff]  ;;  %v332_v15 = vmul.f32 -1.442695, %v52_v11  ;;  %v333_v16 = vmul.f32 -1.442695, %v53_v12 }
   0xf   :  { %v137_v1 = vshrl.u32 %v136_v0, 7  ;;  %v142_v2 = vand.u32 127, %v136_v0  ;;  %v132_v19 = vld [vmem:[#allocation5] sm:$0xff]  ;;  %v334_v20 = vmul.f32 -1.442695, %v54_v13  ;;  %v133_v23 = vld [vmem:[#allocation5 + $0x8] sm:$0xff] }
  0x10   :  { %v335_v21 = vmul.f32 -1.442695, %v55_v14  ;;  %347 = vpow2.f32 %v332_v15  ;;  %v134_v24 = vld [vmem:[#allocation5 + $0x10] sm:$0xff]  ;;  %v135_v27 = vld [vmem:[#allocation5 + $0x18] sm:$0xff]  ;;  %s299_s1 = sshll.u32 %s495_s0, 4  ;;  %s496_s30 = smov [#allocation10]   ;;  %s300_s1 = int_to_ptr.vmem [resolvable:$true] %s299_s1 }
  0x11   :  { %v138_v3 = vadd.s32 8, %v137_v1  ;;  %v139_v4 = vadd.s32 16, %v137_v1  ;;  %v140_v5 = vadd.s32 24, %v137_v1  ;;  %v143_v6 = vmul.u32 128, %v137_v1  ;;  %s310_s5 = sshll.u32 %s496_s30, 4  ;;  %s312_s8 = sshll.u32 %s614_s4, 4  ;;  %s311_s5 = int_to_ptr.vmem [resolvable:$true] %s310_s5  ;;  %s313_s8 = int_to_ptr.hbm [resolvable:$true] %s312_s8 }
  0x12   :  { %349 = vpow2.f32 %v333_v16  ;;  %s497_s9 = smov [#allocation7]   ;;  %s290_s13 = sshll.u32 %s612_s2, 4  ;;  %s291_s13 = int_to_ptr.hbm [resolvable:$true] %s290_s13 }
  0x13   :  { %v144_v7 = vmul.u32 128, %v138_v3  ;;  %v145_v8 = vmul.u32 128, %v139_v4  ;;  %v146_v9 = vmul.u32 128, %v140_v5  ;;  %v529_v10 = vadd.s32 %v143_v6, %v142_v2  ;;  %s288_s10 = sshll.u32 %s497_s9, 4  ;;  %s289_s10 = int_to_ptr.vmem [resolvable:$true] %s288_s10 }
  0x14   :  { %351 = vpow2.f32 %v334_v20 }
  0x15   :  { %v531_v17 = vadd.s32 %v144_v7, %v142_v2  ;;  %v533_v18 = vadd.s32 %v145_v8, %v142_v2  ;;  %v535_v22 = vadd.s32 %v146_v9, %v142_v2  ;;  %vm151_vm0 = vcmp.lt.s32.totalorder %v529_v10, 2048 }
  0x16   :  { %v542_v25 = vsel %vm151_vm0, %v132_v19, 0.0  ;;  %353 = vpow2.f32 %v335_v21  ;;  %v348_v32 = vpop.eup %347 }
  0x17   :  { %vm152_vm1 = vcmp.lt.s32.totalorder %v531_v17, 2048  ;;  %vm153_vm2 = vcmp.lt.s32.totalorder %v533_v18, 2048  ;;  %vm154_vm3 = vcmp.lt.s32.totalorder %v535_v22, 2048  ;;  %v68_v35 = vadd.f32 1.0, %v348_v32 }
  0x18   :  { %v546_v26 = vsel %vm152_vm1, %v133_v23, 0.0  ;;  %v553_v29 = vsel %vm153_vm2, %v134_v24, 0.0  ;;  %v558_v31 = vsel %vm154_vm3, %v135_v27, 0.0  ;;  %v350_v34 = vpop.eup %349 }
  0x19   :  { %v175_v28 = vadd.f32 %v546_v26, %v542_v25  ;;  %v69_v37 = vadd.f32 1.0, %v350_v34  ;;  %355 = vrcp.f32 %v68_v35  ;;  %v81_v41 = vand.u32 2147483647, %v68_v35 }
  0x1a   :  { %v352_v36 = vpop.eup %351  ;;  %v83_v42 = vand.u32 2147483648, %v68_v35  ;;  %vm77_vm4 = vweird.f32 %v68_v35 }
  0x1b   :  { %v176_v30 = vadd.f32 %v175_v28, %v553_v29  ;;  %v70_v39 = vadd.f32 1.0, %v352_v36  ;;  %357 = vrcp.f32 %v69_v37  ;;  %v98_v44 = vand.u32 2147483648, %v69_v37 }
  0x1c   :  { %v354_v38 = vpop.eup %353  ;;  %vm561_vm5 = vcmp.eq.f32.partialorder %v81_v41, 8.507059e+37  ;;  %vm92_vm6 = vweird.f32 %v69_v37  ;;  %v84_v49 = vor.u32 1.1754944e-38, %v83_v42  ;;  %v96_v51 = vand.u32 2147483647, %v69_v37 }
  0x1d   :  { %v177_v33 = vadd.f32 %v176_v30, %v558_v31  ;;  %v71_v40 = vadd.f32 1.0, %v354_v38  ;;  %359 = vrcp.f32 %v70_v39  ;;  %vm107_vm7 = vweird.f32 %v70_v39 }
  0x1e   :  { %v111_v54 = vand.u32 2147483647, %v70_v39  ;;  %v99_v57 = vor.u32 1.1754944e-38, %v98_v44  ;;  %v113_v58 = vand.u32 2147483648, %v70_v39  ;;  %vm97_vm15 = vcmp.eq.f32.partialorder %v96_v51, 8.507059e+37 }
  0x1f   :  { %178 = vst [vmem:[#allocation10] sm:$0xff] %v177_v33  ;;  %361 = vrcp.f32 %v71_v40  ;;  %v356_v43 = vpop.eup %355  ;;  %vm122_vm12 = vweird.f32 %v71_v40  ;;  %v126_v0 = vand.u32 2147483647, %v71_v40  ;;  %v128_v1 = vand.u32 2147483648, %v71_v40 }
  0x20   :  { %v73_v46 = vmul.f32 %v356_v43, %v68_v35  ;;  %vm78_vm8 = vweird.f32 %v356_v43  ;;  %v114_v8 = vor.u32 1.1754944e-38, %v113_v58 }
  0x21   :  { %v358_v45 = vpop.eup %357  ;;  %vm566_vm11 = vmor %vm77_vm4, %vm78_vm8  ;;  %vm112_vm8 = vcmp.eq.f32.partialorder %v111_v54, 8.507059e+37  ;;  %v129_v15 = vor.u32 1.1754944e-38, %v128_v1 }
  0x22   :  { %v88_v50 = vmul.f32 %v358_v45, %v69_v37  ;;  %v74_v52 = vsub.f32 1.0, %v73_v46  ;;  %vm93_vm9 = vweird.f32 %v358_v45 }
  0x23   :  { %v360_v48 = vpop.eup %359  ;;  %vm571_vm13 = vmor %vm92_vm6, %vm93_vm9  ;;  %vm127_vm9 = vcmp.eq.f32.partialorder %v126_v0, 8.507059e+37 }
  0x24   :  { %v103_v53 = vmul.f32 %v360_v48, %v70_v39  ;;  %v89_v56 = vsub.f32 1.0, %v88_v50  ;;  %v75_v59 = vmul.f32 %v356_v43, %v74_v52  ;;  %vm108_vm10 = vweird.f32 %v360_v48 }
  0x25   :  { %v362_v55 = vpop.eup %361  ;;  %vm576_vm4 = vmor %vm107_vm7, %vm108_vm10 }
  0x26   :  { %v104_v60 = vsub.f32 1.0, %v103_v53  ;;  %v118_v61 = vmul.f32 %v362_v55, %v71_v40  ;;  %v90_v63 = vmul.f32 %v358_v45, %v89_v56  ;;  %v76_v2 = vadd.f32 %v356_v43, %v75_v59 }
  0x27   :  { %vm123_vm14 = vweird.f32 %v362_v55 }
  0x28   :  { %v105_v4 = vmul.f32 %v360_v48, %v104_v60  ;;  %v119_v5 = vsub.f32 1.0, %v118_v61  ;;  %v91_v6 = vadd.f32 %v358_v45, %v90_v63  ;;  %v80_v9 = vsel %vm566_vm11, %v356_v43, %v76_v2  ;;  %vm124_vm6 = vmor %vm122_vm12, %vm123_vm14 }
  0x29   :  { %v85_v13 = vsel %vm561_vm5, %v84_v49, %v80_v9 }
  0x2a   :  { %v106_v11 = vadd.f32 %v360_v48, %v105_v4  ;;  %v120_v12 = vmul.f32 %v362_v55, %v119_v5  ;;  %v95_v14 = vsel %vm571_vm13, %v358_v45, %v91_v6  ;;  %v155_v21 = vsel %vm151_vm0, %v85_v13, 0.0 }
  0x2b   :  { %v100_v16 = vsel %vm97_vm15, %v99_v57, %v95_v14  ;;  %v163_v27 = vmul.f32 %v542_v25, %v155_v21 }
  0x2c   :  { %v110_v19 = vsel %vm576_vm4, %v360_v48, %v106_v11  ;;  %v121_v20 = vadd.f32 %v362_v55, %v120_v12  ;;  %v156_v24 = vsel %vm152_vm1, %v100_v16, 0.0 }
  0x2d   :  { %v115_v23 = vsel %vm112_vm8, %v114_v8, %v110_v19  ;;  %v171_v32 = vadd.f32 %v156_v24, %v155_v21  ;;  %v164_v33 = vmul.f32 %v546_v26, %v156_v24 }
  0x2e   :  { %v125_v28 = vsel %vm124_vm6, %v362_v55, %v121_v20  ;;  %v157_v30 = vsel %vm153_vm2, %v115_v23, 0.0 }
  0x2f   :  { %v130_v34 = vsel %vm127_vm9, %v129_v15, %v125_v28  ;;  %v165_v35 = vmul.f32 %v553_v29, %v157_v30  ;;  %v172_v17 = vadd.f32 %v171_v32, %v157_v30  ;;  %v167_v25 = vadd.f32 %v164_v33, %v163_v27 }
  0x30   :  { %v158_v10 = vsel %vm154_vm3, %v130_v34, 0.0 }
  0x31   :  { %v166_v18 = vmul.f32 %v558_v31, %v158_v10  ;;  %v173_v26 = vadd.f32 %v172_v17, %v158_v10  ;;  %v168_v29 = vadd.f32 %v167_v25, %v165_v35 }
  0x33   :  { %174 = vst [vmem:[#allocation8] sm:$0xff] %v173_v26  ;;  %v169_v22 = vadd.f32 %v168_v29, %v166_v18 }
  0x34   :  { %304 = dma.vmem_to_hbm [thread:$0]  %s300_s1, 128, %s302_s29, [#allocation9]  }
  0x35   :  { %170 = vst [vmem:[#allocation7] sm:$0xff] %v169_v22  ;;  %315 = dma.vmem_to_hbm [thread:$0]  %s311_s5, 128, %s313_s8, [#allocation9]  }
  0x36   :  { %293 = dma.vmem_to_hbm [thread:$0]  %s289_s10, 128, %s291_s13, [#allocation4]  }
  0x37   :  { %487 = dma.done.wait [#allocation4], 128  }
  0x38   :  { %488 = vsyncadd [#allocation4], 4294967168 }
  0x39   :  { %489 = dma.done.wait [#allocation9], 256  }
  0x3a   :  { %490 = vsyncadd [#allocation9], 4294967040 }
  0x3b   :  { %328 = vsyncpa [#allocation3], 1 }
  0x3c   :  { %329 = vsyncpa [#allocation6], 1 }
  0x3d   :  { %330 = vsyncpa [#allocation4], 1 }
  0x3e   :  { %331 = vsyncpa [#allocation9], 1 }

</bundles_post_ra>
